<compile_context>
chip_gen: v5e
topology: v5e:2x2
jax: 0.10.0
libtpu: 0.0.40
codegen_flags: <defaults>
</compile_context>

<pallas_src>
import functools

import jax
import jax.numpy as jnp
from jax import lax
from jax.experimental import pallas as pl
from jax.experimental.pallas import tpu as pltpu


def _coda_prompt_kernel(x_ref, k_ref, a_ref, p_ref, out_ref):
    # x_ref:   (B, key_d)        query features
    # k_ref:   (pool, key_d)     keys K      (already task-sliced)
    # a_ref:   (pool, key_d)     attention A (already task-sliced)
    # p_ref:   (pool, P*emb_d)   prompts, flattened lane-dense
    # out_ref: (B, P*emb_d)      composed prompt P_, flattened lane-dense
    x = x_ref[...]
    K = k_ref[...]
    A = a_ref[...]
    p = p_ref[...]

    # n_K = F.normalize(K, dim=1)
    k_norm = jnp.sqrt(jnp.sum(K * K, axis=1, keepdims=True))
    n_K = K / jnp.maximum(k_norm, 1e-12)

    # aq_k[b,k] = sum_d (x[b,d]*A[k,d]) * n_K[k,d]  /  || x[b,:]*A[k,:] ||_2
    # numerator and squared-norm both become (B, pool) matmuls on the MXU.
    contract = (((1,), (1,)), ((), ()))  # contract dim-1 of lhs with dim-1 of rhs
    numer = lax.dot_general(x, A * n_K, contract,
                            preferred_element_type=jnp.float32)
    sq = lax.dot_general(x * x, A * A, contract,
                         preferred_element_type=jnp.float32)
    denom = jnp.maximum(jnp.sqrt(sq), 1e-12)
    aq_k = numer / denom                                   # (B, pool)

    # P_[b, :] = sum_k aq_k[b,k] * p[k, :]
    out_ref[...] = jnp.dot(aq_k.astype(p.dtype), p,
                           preferred_element_type=jnp.float32
                           ).astype(out_ref.dtype)


def _ortho_penalty(t):
    eye = jnp.eye(t.shape[0], dtype=t.dtype)
    return jnp.mean((t @ t.T - eye) ** 2) * 1e-6


@functools.partial(
    jax.jit,
    static_argnames=("l", "e_layers", "e_p_length", "e_pool_size", "n_tasks",
                     "task_count", "FPS", "train", "ortho_mu"))
def coda_prompt_forward(x_querry, l, x_block, params, *,
                        e_pool_size, e_p_length, n_tasks,
                        task_count=0, e_layers=(0, 1, 2, 3, 4),
                        FPS=False, train=False, ortho_mu=0.0):
    """Pallas implementation of CodaPrompt.forward.

    x_querry: (B, key_d) float32
    params:   {layer: (K (pool,key_d), A (pool,key_d), p (pool, P, emb_d))}
    Returns ((Ek, Ev), loss, x_block); (None, 0, x_block) if l not in e_layers.
    """
    if x_querry is None:
        raise ValueError("x_querry is None")
    if l not in e_layers:
        return None, 0, x_block

    K, A, p = params[l]
    if FPS:
        f = e_pool_size
    else:
        pt = e_pool_size // n_tasks
        f = (task_count + 1) * pt
    # Train-mode detach()/cat() only changes grads; forward values are [0:f].
    K, A, p = K[:f], A[:f], p[:f]

    B = x_querry.shape[0]
    pool, P, De = p.shape
    p_flat = p.reshape(pool, P * De)       # lane-dense prompt slab

    vmem = pl.BlockSpec(memory_space=pltpu.MemorySpace.VMEM)
    p_out = pl.pallas_call(
        _coda_prompt_kernel,
        out_shape=jax.ShapeDtypeStruct((B, P * De), x_querry.dtype),
        in_specs=[vmem, vmem, vmem, vmem],
        out_specs=vmem,
    )(x_querry, K, A, p_flat)

    P_ = p_out.reshape(B, P, De)
    half = e_p_length // 2
    Ek = P_[:, :half, :]
    Ev = P_[:, half:, :]

    loss = 0
    if train and ortho_mu > 0:
        loss = (_ortho_penalty(K) + _ortho_penalty(A)
                + _ortho_penalty(p.reshape(pool, -1))) * ortho_mu
    return (Ek, Ev), loss, x_block


if __name__ == "__main__":
    # Small shapes consistent with the module:
    #   batch=2, key_d=32, emb_d=32, e_pool_size=16, e_p_length=8,
    #   n_tasks=4, task_count=1  ->  active pool slice f = 8
    B, key_d, emb_d, pool, P = 2, 32, 32, 16, 8
    n_tasks, task_count = 4, 1
    e_layers = (0, 1, 2, 3, 4)

    key = jax.random.PRNGKey(0)
    kx, kb, kK, kA, kp = jax.random.split(key, 5)
    x_querry = jax.random.normal(kx, (B, key_d), dtype=jnp.float32)
    x_block = jax.random.normal(kb, (B, 16, emb_d), dtype=jnp.float32)
    # Plain random parameter init for the test (orthonormal init is init-time).
    params = {
        lyr: (jax.random.normal(jax.random.fold_in(kK, lyr), (pool, key_d), jnp.float32),
              jax.random.normal(jax.random.fold_in(kA, lyr), (pool, key_d), jnp.float32),
              jax.random.normal(jax.random.fold_in(kp, lyr), (pool, P, emb_d), jnp.float32))
        for lyr in e_layers
    }

    layer = 2
    (ek, ev), loss, xb_out = coda_prompt_forward(
        x_querry, layer, x_block, params,
        e_pool_size=pool, e_p_length=P, n_tasks=n_tasks,
        task_count=task_count, e_layers=e_layers)
    jax.block_until_ready((ek, ev, xb_out))

    # ---- reference (plain JAX mirror of the PyTorch math) ----
    pt = pool // n_tasks
    f = (task_count + 1) * pt
    Kf, Af, pf = (params[layer][0][:f], params[layer][1][:f], params[layer][2][:f])
    hp = jax.lax.Precision.HIGHEST
    a_q = jnp.einsum('bd,kd->bkd', x_querry, Af)
    n_K = Kf / jnp.maximum(jnp.linalg.norm(Kf, axis=1, keepdims=True), 1e-12)
    qn = a_q / jnp.maximum(jnp.linalg.norm(a_q, axis=2, keepdims=True), 1e-12)
    aq_k = jnp.einsum('bkd,kd->bk', qn, n_K, precision=hp)
    P_ref = jnp.einsum('bk,kld->bld', aq_k, pf, precision=hp)
    half = P // 2
    ref_ek, ref_ev = P_ref[:, :half, :], P_ref[:, half:, :]

    assert ek.shape == (B, half, emb_d) and ev.shape == (B, P - half, emb_d)
    assert jnp.allclose(ek, ref_ek, rtol=2e-2, atol=2e-2)
    assert jnp.allclose(ev, ref_ev, rtol=2e-2, atol=2e-2)
    assert int(loss) == 0
    assert jnp.array_equal(xb_out, x_block)

    # Layer not in e_layers -> passthrough branch.
    pr, loss2, xb2 = coda_prompt_forward(
        x_querry, 7, x_block, params,
        e_pool_size=pool, e_p_length=P, n_tasks=n_tasks,
        task_count=task_count, e_layers=e_layers)
    assert pr is None and int(loss2) == 0

    print("KERNEL_OK")
</pallas_src>

<mosaic_0001>
module attributes {stable_mosaic.version = 11 : i64} {
  func.func @_coda_prompt_kernel(%arg0: memref<2x32xf32, #tpu.memory_space<vmem>>, %arg1: memref<8x32xf32, #tpu.memory_space<vmem>>, %arg2: memref<8x32xf32, #tpu.memory_space<vmem>>, %arg3: memref<8x256xf32, #tpu.memory_space<vmem>>, %arg4: memref<2x256xf32, #tpu.memory_space<vmem>>) attributes {dimension_semantics = [], scalar_prefetch = 0 : i64, scratch_operands = 0 : i64, tpu.core_type = #tpu.core_type<tc>} {
    %c0 = arith.constant 0 : index
    %c0_0 = arith.constant 0 : index
    %0 = vector.load %arg0[%c0, %c0_0] : memref<2x32xf32, #tpu.memory_space<vmem>>, vector<2x32xf32>
    %c0_1 = arith.constant 0 : index
    %c0_2 = arith.constant 0 : index
    %1 = vector.load %arg1[%c0_1, %c0_2] : memref<8x32xf32, #tpu.memory_space<vmem>>, vector<8x32xf32>
    %c0_3 = arith.constant 0 : index
    %c0_4 = arith.constant 0 : index
    %2 = vector.load %arg2[%c0_3, %c0_4] : memref<8x32xf32, #tpu.memory_space<vmem>>, vector<8x32xf32>
    %c0_5 = arith.constant 0 : index
    %c0_6 = arith.constant 0 : index
    %3 = vector.load %arg3[%c0_5, %c0_6] : memref<8x256xf32, #tpu.memory_space<vmem>>, vector<8x256xf32>
    %4 = arith.mulf %1, %1 : vector<8x32xf32>
    %cst = arith.constant dense<0.000000e+00> : vector<8xf32>
    %5 = vector.multi_reduction <add>, %4, %cst [1] : vector<8x32xf32> to vector<8xf32>
    %6 = vector.shape_cast %5 : vector<8xf32> to vector<8x1xf32>
    %7 = math.sqrt %6 : vector<8x1xf32>
    %cst_7 = arith.constant 9.99999996E-13 : f32
    %8 = vector.broadcast %cst_7 : f32 to vector<8x1xf32>
    %9 = arith.maximumf %7, %8 : vector<8x1xf32>
    %10 = vector.broadcast %9 : vector<8x1xf32> to vector<8x32xf32>
    %11 = arith.divf %1, %10 : vector<8x32xf32>
    %12 = arith.mulf %2, %11 : vector<8x32xf32>
    %cst_8 = arith.constant dense<0.000000e+00> : vector<2x8xf32>
    %13 = tpu.matmul %0, %12, %cst_8 {dimension_numbers = #tpu.dot_dimension_numbers<[1], [1], [0], [0], [0, 0, 1, 0], [], []>} : vector<2x32xf32>, vector<8x32xf32>, vector<2x8xf32> -> vector<2x8xf32>
    %14 = arith.mulf %0, %0 : vector<2x32xf32>
    %15 = arith.mulf %2, %2 : vector<8x32xf32>
    %cst_9 = arith.constant dense<0.000000e+00> : vector<2x8xf32>
    %16 = tpu.matmul %14, %15, %cst_9 {dimension_numbers = #tpu.dot_dimension_numbers<[1], [1], [0], [0], [0, 0, 1, 0], [], []>} : vector<2x32xf32>, vector<8x32xf32>, vector<2x8xf32> -> vector<2x8xf32>
    %17 = math.sqrt %16 : vector<2x8xf32>
    %cst_10 = arith.constant 9.99999996E-13 : f32
    %18 = vector.broadcast %cst_10 : f32 to vector<2x8xf32>
    %19 = arith.maximumf %17, %18 : vector<2x8xf32>
    %20 = arith.divf %13, %19 : vector<2x8xf32>
    %cst_11 = arith.constant dense<0.000000e+00> : vector<2x256xf32>
    %21 = tpu.matmul %20, %3, %cst_11 {dimension_numbers = #tpu.dot_dimension_numbers<[1], [0], [0], [1], [0, 0, 1, 1], [], []>} : vector<2x8xf32>, vector<8x256xf32>, vector<2x256xf32> -> vector<2x256xf32>
    %c0_12 = arith.constant 0 : index
    %c0_13 = arith.constant 0 : index
    %22 = vector.load %arg4[%c0_12, %c0_13] : memref<2x256xf32, #tpu.memory_space<vmem>>, vector<2x256xf32>
    tpu.vector_store %arg4[%c0_12, %c0_13], %21 {strides = array<i32>} : memref<2x256xf32, #tpu.memory_space<vmem>>, vector<2x256xf32>,
    return
  }
}

</mosaic_0001>

<bundles_post_ra>
// kernel: coda_prompt_forward.1
= control target key start
LH: loop header
LB: loop body
LE: loop exit
PB: predicated region body
PF: predicated region fallthrough
CT: control target
= control target key end

     0   :  { %vm23_vm0 = vcmask 261120   ;;  %vm138_vm13 = vcmask 64512   ;;  %vm185_vm14 = vcmask 1041408   ;;  %s255_s1 = inlined_call_operand.vmem [shape: f32[8,32], index: 1, kind: input, shape index: {}]   ;;  %s256_s2 = inlined_call_operand.vmem [shape: f32[8,32], index: 2, kind: input, shape index: {}]   ;;  %s257_s0 = inlined_call_operand.vmem [shape: f32[2,32], index: 0, kind: input, shape index: {}]   ;;  %s258_s3 = inlined_call_operand.vmem [shape: f32[8,256], index: 3, kind: input, shape index: {}]   ;;  %s259_s4 = inlined_call_operand.vmem [shape: f32[2,256], index: 4, kind: output, shape index: {}]  }
   0x1   :  { %v18_v0 = vld [vmem:[%s255_s1] sm:$0xff]  ;;  %v21_v44 = vld [vmem:[%s258_s3 + $0x8] sm:$0xff] }
   0x2   :  { %v19_v1 = vld [vmem:[%s256_s2] sm:$0xff]  ;;  %v22_v3 = vmul.f32 %v18_v0, %v18_v0  ;;  %177 = vmatpush.msra.mxu3 %v21_v44 }
   0x3   :  { %v17_v2 = vld [vmem:[%s257_s0] sm:$0x3]  ;;  %v83_v4 = vmul.f32 %v19_v1, %v19_v1 }
   0x4   :  { %v82_v5 = vmul.f32 %v17_v2, %v17_v2  ;;  %v24_v6 = vsel %vm23_vm0, %v22_v3, 0.0  ;;  %v20_v43 = vld [vmem:[%s258_s3] sm:$0xff] }
   0x5   :  { %195 = vmatpush.xpose.msk.msra.mxu1 %vm23_vm0, %v83_v4  ;;  %25 = vadd.xlane.f32.xlu0 %v24_v6 }
   0x6   :  { %157 = vmatpush.msra.mxu2 %v20_v43 }
   0x8   :  { %196 = vmatmul.msk.f32.vlgmr.msra.gmra.mxu1 %vm23_vm0, %v82_v5 }
  0x78   :  { %v26_v7 = vpop.xlane.xlu0 %25 }
  0x79   :  { %199 = vrsqrt.f32 %v26_v7  ;;  %vm34_vm1 = vcmp.eq.f32.partialorder %v26_v7, inf  ;;  %v37_v15 = vand.u32 2147483648, %v26_v7  ;;  %vm36_vm2 = vcmp.eq.f32.partialorder %v26_v7, 0.0 }
  0x7f   :  { %v200_v8 = vpop.eup %199 }
  0x80   :  { %v28_v9 = vmul.f32 %v200_v8, %v26_v7 }
  0x82   :  { %v29_v10 = vmul.f32 %v200_v8, %v28_v9 }
  0x84   :  { %v30_v11 = vmul.f32 0.5, %v29_v10 }
  0x85   :  { %v107_v31 = vpop.f32.mrf.mxu1 }
  0x86   :  { %v31_v12 = vsub.f32 1.5, %v30_v11  ;;  %vm117_vm7 = vcmp.eq.f32.partialorder %v107_v31, inf  ;;  %v120_v39 = vand.u32 2147483648, %v107_v31  ;;  %vm119_vm8 = vcmp.eq.f32.partialorder %v107_v31, 0.0 }
  0x88   :  { %v32_v13 = vmul.f32 %v200_v8, %v31_v12 }
  0x8a   :  { %v33_v14 = vmul.f32 %v32_v13, %v26_v7 }
  0x8c   :  { %v35_v16 = vsel %vm34_vm1, %v26_v7, %v33_v14 }
  0x8d   :  { %v38_v17 = vsel %vm36_vm2, %v37_v15, %v35_v16 }
  0x8e   :  { %v39_v18 = vmax.f32 %v38_v17, 1e-12 }
  0x90   :  { %201 = vrcp.f32 %v39_v18  ;;  %v51_v22 = vand.u32 2147483648, %v39_v18  ;;  %v49_v24 = vand.u32 2147483647, %v39_v18  ;;  %vm45_vm4 = vweird.f32 %v39_v18 }
  0x91   :  { %203 = vrsqrt.f32 %v107_v31 }
  0x92   :  { %v52_v26 = vor.u32 1.1754944e-38, %v51_v22  ;;  %vm50_vm6 = vcmp.eq.f32.partialorder %v49_v24, 8.507059e+37 }
  0x96   :  { %v202_v19 = vpop.eup %201 }
  0x97   :  { %v41_v20 = vmul.f32 %v202_v19, %v39_v18  ;;  %vm46_vm3 = vweird.f32 %v202_v19  ;;  %v204_v32 = vpop.eup %203 }
  0x98   :  { %vm47_vm5 = vmor %vm45_vm4, %vm46_vm3  ;;  %v111_v33 = vmul.f32 %v204_v32, %v107_v31 }
  0x99   :  { %v42_v21 = vsub.f32 1.0, %v41_v20 }
  0x9a   :  { %v112_v34 = vmul.f32 %v204_v32, %v111_v33 }
  0x9b   :  { %v43_v23 = vmul.f32 %v202_v19, %v42_v21 }
  0x9c   :  { %v113_v35 = vmul.f32 0.5, %v112_v34 }
  0x9d   :  { %v44_v25 = vadd.f32 %v202_v19, %v43_v23 }
  0x9e   :  { %v114_v36 = vsub.f32 1.5, %v113_v35 }
  0x9f   :  { %v48_v27 = vsel %vm47_vm5, %v202_v19, %v44_v25 }
  0xa0   :  { %v53_v28 = vsel %vm50_vm6, %v52_v26, %v48_v27  ;;  %v115_v37 = vmul.f32 %v204_v32, %v114_v36 }
  0xa1   :  { %v54_v29 = vmul.f32 %v53_v28, %v18_v0 }
  0xa2   :  { %v116_v38 = vmul.f32 %v115_v37, %v107_v31 }
  0xa3   :  { %v55_v30 = vmul.f32 %v54_v29, %v19_v1 }
  0xa4   :  { %v118_v40 = vsel %vm117_vm7, %v107_v31, %v116_v38 }
  0xa5   :  { %193 = vmatpush.xpose.msk.msra.mxu0 %vm23_vm0, %v55_v30  ;;  %v121_v41 = vsel %vm119_vm8, %v120_v39, %v118_v40 }
  0xa6   :  { %v122_v42 = vmax.f32 %v121_v41, 1e-12 }
  0xa8   :  { %194 = vmatmul.msk.f32.vlgmr.msra.gmra.mxu0 %vm23_vm0, %v17_v2  ;;  %205 = vrcp.f32 %v122_v42  ;;  %vm128_vm9 = vweird.f32 %v122_v42  ;;  %v134_v49 = vand.u32 2147483648, %v122_v42  ;;  %v132_v51 = vand.u32 2147483647, %v122_v42 }
  0xaa   :  { %v135_v52 = vor.u32 1.1754944e-38, %v134_v49  ;;  %vm133_vm12 = vcmp.eq.f32.partialorder %v132_v51, 8.507059e+37 }
  0xae   :  { %v206_v45 = vpop.eup %205 }
  0xaf   :  { %v124_v46 = vmul.f32 %v206_v45, %v122_v42  ;;  %vm129_vm10 = vweird.f32 %v206_v45 }
  0xb0   :  { %vm130_vm11 = vmor %vm128_vm9, %vm129_vm10 }
  0xb1   :  { %v125_v47 = vsub.f32 1.0, %v124_v46 }
  0xb3   :  { %v126_v48 = vmul.f32 %v206_v45, %v125_v47 }
  0xb5   :  { %v127_v50 = vadd.f32 %v206_v45, %v126_v48 }
  0xb7   :  { %v131_v53 = vsel %vm130_vm11, %v206_v45, %v127_v50 }
  0xb8   :  { %v136_v55 = vsel %vm133_vm12, %v135_v52, %v131_v53 }
 0x125   :  { %v79_v54 = vpop.f32.mrf.mxu0 }
 0x126   :  { %v137_v56 = vmul.f32 %v136_v55, %v79_v54 }
 0x128   :  { %197 = vmatmul.msk.f32.vlgmr.msra.gmra.mxu2 %vm138_vm13, %v137_v56  ;;  %198 = vmatmul.msk.f32.vlgmr.msra.gmra.mxu3 %vm138_vm13, %v137_v56 }
 0x1ab   :  { %v179_v57 = vpop.f32.mrf.mxu3  ;;  %v159_v59 = vpop.f32.mrf.mxu2 }
 0x1ac   :  { %v184_v58 = vrot.slane %v179_v57, 6 }
 0x1ae   :  { %v186_v60 = vsel %vm185_vm14, %v159_v59, %v184_v58 }
 0x1af   :  { %188 = vst [vmem:[%s259_s4] sm:$0xf] %v186_v60 }

</bundles_post_ra>
